<compile_context>
chip_gen: v5e
topology: v5e:2x2
jax: 0.10.0
libtpu: 0.0.40
codegen_flags: <defaults>
</compile_context>

<pallas_src>
import functools

import jax
import jax.numpy as jnp
from jax.experimental import pallas as pl
from jax.experimental.pallas import tpu as pltpu

EPS = 1e-5
KDIM = 32    # padded contraction (fan-in) width; max real fan-in is 32
FPAD = 128   # lane-aligned output (fan-out) width
VROWS = 8    # extra rows per parameter plane holding bias / gamma / beta


def mlp_kernel(x_ref, p_ref, o_ref, pad_ref, *, n_hidden, kdim):
    """x_ref: (B, f_in) f32; p_ref: (n_hidden+1, kdim+VROWS, 128) bf16;
    o_ref: (B, 128) f32; pad_ref: (B, kdim) f32 VMEM scratch."""
    batch, f_in = x_ref.shape

    # Fold the input zero-pad into the kernel: zero the (B, kdim) scratch and
    # masked-store the real features into lanes [0, f_in).
    pad_ref[...] = jnp.zeros_like(pad_ref)
    pad_ref[:, 0:f_in] = x_ref[...]
    h = pad_ref[...]                                  # (B, kdim) f32, pad lanes 0

    for layer in range(n_hidden):
        w = p_ref[layer, 0:kdim, :]                   # (kdim, 128) bf16, zero-padded
        vec = p_ref[layer, kdim:kdim + 3, :].astype(jnp.float32)   # (3, 128)
        b, gamma, beta = vec[0:1, :], vec[1:2, :], vec[2:3, :]

        # Linear (bf16 MXU operands, f32 accumulation) + bias + ReLU
        z = jnp.dot(h.astype(jnp.bfloat16), w,
                    preferred_element_type=jnp.float32) + b
        z = jnp.maximum(z, 0.0)

        # BatchNorm1d: training-mode batch stats, biased variance, f32 math,
        # centered two-pass variance (numerically matches the reference form).
        mean = jnp.mean(z, axis=0, keepdims=True)                  # (1, 128)
        zc = z - mean
        var = jnp.mean(zc * zc, axis=0, keepdims=True)
        scale = gamma * jax.lax.rsqrt(var + EPS)
        h_full = zc * scale + beta                                 # (B, 128)

        # Padded lanes (>= fan_out) stay exactly 0 (zero w/b/gamma/beta), so
        # keeping only the first kdim lanes preserves every real feature while
        # keeping the next matmul's contraction dimension at 32.
        h = h_full[:, 0:kdim]

    # Final Linear: lane-dense 128-wide write; only the first 2 lanes are real.
    w = p_ref[n_hidden, 0:kdim, :]
    b = p_ref[n_hidden, kdim:kdim + 1, :].astype(jnp.float32)
    o_ref[...] = jnp.dot(h.astype(jnp.bfloat16), w,
                         preferred_element_type=jnp.float32) + b


def init_params(key, neurons, in_features=5, out_features=2):
    """Deterministic PyTorch-style init. Returns a flat list:
       [W0, b0, g0, beta0, ..., W4, b4, g4, beta4, W_out, b_out]
       with weights already transposed to (in, out) and 1D vectors as (1, n)."""
    dims = [in_features] + list(neurons)
    params = []
    for i in range(len(neurons)):
        fan_in, fan_out = dims[i], dims[i + 1]
        key, kw, kb, kg, kbe = jax.random.split(key, 5)
        bound = 1.0 / jnp.sqrt(fan_in)
        w = jax.random.uniform(kw, (fan_in, fan_out), jnp.float32, -bound, bound)
        b = jax.random.uniform(kb, (1, fan_out), jnp.float32, -bound, bound)
        gamma = 1.0 + 0.1 * jax.random.normal(kg, (1, fan_out), jnp.float32)
        beta = 0.1 * jax.random.normal(kbe, (1, fan_out), jnp.float32)
        params += [w, b, gamma, beta]
    fan_in = dims[-1]
    key, kw, kb = jax.random.split(key, 3)
    bound = 1.0 / jnp.sqrt(fan_in)
    w = jax.random.uniform(kw, (fan_in, out_features), jnp.float32, -bound, bound)
    b = jax.random.uniform(kb, (1, out_features), jnp.float32, -bound, bound)
    params += [w, b]
    return params


def pack_params(params, kdim=KDIM, fpad=FPAD, dtype=jnp.bfloat16):
    """Pack the flat param list into ONE zero-padded slab (n_layers, kdim+8, fpad):
       rows 0..kdim-1  : (in, out) weight
       rows kdim..kdim+2: bias / gamma / beta  (final layer: bias only)
       Zero padding of weights/bias/gamma/beta keeps lanes >= fan_out exactly 0
       through Linear+ReLU+BN (the lane-dense invariant the kernel relies on)."""
    n_blocks = (len(params) - 2) // 4
    n_layers = n_blocks + 1
    slab = jnp.zeros((n_layers, kdim + VROWS, fpad), jnp.float32)
    idx = 0
    for i in range(n_blocks):
        w, b, g, be = params[idx:idx + 4]
        idx += 4
        fi, fo = w.shape
        assert fi <= kdim and fo <= fpad
        slab = slab.at[i, :fi, :fo].set(w)
        slab = slab.at[i, kdim, :fo].set(b.reshape(-1))
        slab = slab.at[i, kdim + 1, :fo].set(g.reshape(-1))
        slab = slab.at[i, kdim + 2, :fo].set(be.reshape(-1))
    w, b = params[idx], params[idx + 1]
    fi, fo = w.shape
    assert fi <= kdim and fo <= fpad
    slab = slab.at[n_blocks, :fi, :fo].set(w)
    slab = slab.at[n_blocks, kdim, :fo].set(b.reshape(-1))
    return slab.astype(dtype)


@jax.jit
def mymodel1_forward(x, p_slab):
    """Lane-dense forward. Returns a (B, 128) f32 slab; lanes [0, 2) hold the
    model outputs, remaining lanes are exact zeros. The input pad lives inside
    the kernel and the output is not sliced here, so the whole forward is a
    single Pallas launch (perf feedback: avoid wrapper-side XLA pad/slice ops)."""
    batch = x.shape[0]
    n_layers, rows, fpad = p_slab.shape
    kdim = rows - VROWS
    kernel = functools.partial(mlp_kernel, n_hidden=n_layers - 1, kdim=kdim)
    vmem = pl.BlockSpec(memory_space=pltpu.MemorySpace.VMEM)
    return pl.pallas_call(
        kernel,
        out_shape=jax.ShapeDtypeStruct((batch, fpad), jnp.float32),
        in_specs=[vmem, vmem],
        out_specs=vmem,
        scratch_shapes=[pltpu.VMEM((batch, kdim), jnp.float32)],
        compiler_params=pltpu.CompilerParams(vmem_limit_bytes=32 * 1024 * 1024),
    )(x.astype(jnp.float32), p_slab)


def reference_forward(x, params, matmul_dtype=None):
    """Pure-JAX reference mirroring the PyTorch module (training-mode BN).
    With matmul_dtype=jnp.bfloat16 it additionally mirrors the kernel's bf16
    parameter storage / MXU operand precision (f32 accumulation, f32 BN)."""
    def q(p):
        return p if matmul_dtype is None else p.astype(matmul_dtype).astype(jnp.float32)

    def mm(a, w):
        if matmul_dtype is None:
            return a @ w
        return jnp.dot(a.astype(matmul_dtype), w.astype(matmul_dtype),
                       preferred_element_type=jnp.float32)

    h = x.astype(jnp.float32)
    idx = 0
    n_blocks = (len(params) - 2) // 4
    for _ in range(n_blocks):
        w, b, g, bt = params[idx:idx + 4]
        idx += 4
        z = jnp.maximum(mm(h, w) + q(b), 0.0)
        mean = jnp.mean(z, axis=0, keepdims=True)
        var = jnp.mean(jnp.square(z - mean), axis=0, keepdims=True)
        h = q(g) * (z - mean) * jax.lax.rsqrt(var + EPS) + q(bt)
    w, b = params[idx], params[idx + 1]
    return mm(h, w) + q(b)


if __name__ == "__main__":
    neurons = (32, 32, 16, 16, 8)   # consistent with MyModel1(neurons)
    batch = 8
    in_features, out_features = 5, 2

    key = jax.random.PRNGKey(0)
    key, kx = jax.random.split(key)
    x = jax.random.normal(kx, (batch, in_features), jnp.float32)

    params = init_params(key, neurons, in_features=in_features, out_features=out_features)
    p_slab = pack_params(params)

    out_pad = mymodel1_forward(x, p_slab)
    out_pad = jax.block_until_ready(out_pad)
    out = out_pad[:, :out_features]               # the model's (B, 2) outputs

    assert out.shape == (batch, out_features)

    # Tight check: kernel implements exactly the intended computation
    # (bf16 MXU operands + f32 accumulation + f32 BatchNorm math).
    ref_bf16 = reference_forward(x, params, matmul_dtype=jnp.bfloat16)
    assert jnp.allclose(out, ref_bf16, atol=2e-3, rtol=2e-3), \
        "kernel mismatch vs bf16-operand reference"

    # Loose check: bf16 weight/activation quantization of the matmul operands
    # vs the full-f32 module forward (BN renormalizes, so error stays bounded).
    ref_f32 = reference_forward(x, params)
    assert jnp.allclose(out, ref_f32, atol=1e-1, rtol=1e-1), \
        "kernel mismatch vs f32 reference"

    print("KERNEL_OK")
</pallas_src>

<mosaic_0001>
module attributes {stable_mosaic.version = 11 : i64} {
  func.func @mlp_kernel(%arg0: memref<8x5xf32, #tpu.memory_space<vmem>>, %arg1: memref<6x40x128xbf16, #tpu.memory_space<vmem>>, %arg2: memref<8x128xf32, #tpu.memory_space<vmem>>, %arg3: memref<8x32xf32, #tpu.memory_space<vmem>>) attributes {dimension_semantics = [], scalar_prefetch = 0 : i64, scratch_operands = 1 : i64, tpu.core_type = #tpu.core_type<tc>} {
    %cst = arith.constant 0.000000e+00 : f32
    %0 = vector.broadcast %cst : f32 to vector<8x32xf32>
    %c0 = arith.constant 0 : index
    %c0_0 = arith.constant 0 : index
    %1 = vector.load %arg3[%c0, %c0_0] : memref<8x32xf32, #tpu.memory_space<vmem>>, vector<8x32xf32>
    tpu.vector_store %arg3[%c0, %c0_0], %0 {strides = array<i32>} : memref<8x32xf32, #tpu.memory_space<vmem>>, vector<8x32xf32>,
    %c0_1 = arith.constant 0 : index
    %c0_2 = arith.constant 0 : index
    %2 = vector.load %arg0[%c0_1, %c0_2] : memref<8x5xf32, #tpu.memory_space<vmem>>, vector<8x5xf32>
    %c0_3 = arith.constant 0 : index
    %c0_4 = arith.constant 0 : index
    %3 = vector.load %arg3[%c0_3, %c0_4] : memref<8x32xf32, #tpu.memory_space<vmem>>, vector<8x5xf32>
    tpu.vector_store %arg3[%c0_3, %c0_4], %2 {strides = array<i32>} : memref<8x32xf32, #tpu.memory_space<vmem>>, vector<8x5xf32>,
    %c0_5 = arith.constant 0 : index
    %c0_6 = arith.constant 0 : index
    %4 = vector.load %arg3[%c0_5, %c0_6] : memref<8x32xf32, #tpu.memory_space<vmem>>, vector<8x32xf32>
    %c0_7 = arith.constant 0 : index
    %c0_8 = arith.constant 0 : index
    %c0_9 = arith.constant 0 : index
    %5 = vector.load %arg1[%c0_7, %c0_8, %c0_9] : memref<6x40x128xbf16, #tpu.memory_space<vmem>>, vector<1x32x128xbf16>
    %6 = vector.shape_cast %5 : vector<1x32x128xbf16> to vector<32x128xbf16>
    %c0_10 = arith.constant 0 : index
    %c32 = arith.constant 32 : index
    %c0_11 = arith.constant 0 : index
    %7 = vector.load %arg1[%c0_10, %c32, %c0_11] : memref<6x40x128xbf16, #tpu.memory_space<vmem>>, vector<1x3x128xbf16>
    %8 = vector.shape_cast %7 : vector<1x3x128xbf16> to vector<3x128xbf16>
    %9 = arith.extf %8 : vector<3x128xbf16> to vector<3x128xf32>
    %10 = vector.extract_strided_slice %9 {offsets = [0, 0], sizes = [1, 128], strides = [1, 1]} : vector<3x128xf32> to vector<1x128xf32>
    %11 = vector.extract_strided_slice %9 {offsets = [1, 0], sizes = [1, 128], strides = [1, 1]} : vector<3x128xf32> to vector<1x128xf32>
    %12 = vector.extract_strided_slice %9 {offsets = [2, 0], sizes = [1, 128], strides = [1, 1]} : vector<3x128xf32> to vector<1x128xf32>
    %13 = arith.truncf %4 : vector<8x32xf32> to vector<8x32xbf16>
    %cst_12 = arith.constant dense<0.000000e+00> : vector<8x128xf32>
    %14 = tpu.matmul %13, %6, %cst_12 {dimension_numbers = #tpu.dot_dimension_numbers<[1], [0], [0], [1], [0, 0, 1, 1], [], []>} : vector<8x32xbf16>, vector<32x128xbf16>, vector<8x128xf32> -> vector<8x128xf32>
    %15 = vector.broadcast %10 : vector<1x128xf32> to vector<8x128xf32>
    %16 = arith.addf %14, %15 : vector<8x128xf32>
    %cst_13 = arith.constant 0.000000e+00 : f32
    %17 = vector.broadcast %cst_13 : f32 to vector<8x128xf32>
    %18 = arith.maximumf %16, %17 : vector<8x128xf32>
    %cst_14 = arith.constant dense<0.000000e+00> : vector<128xf32>
    %19 = vector.multi_reduction <add>, %18, %cst_14 [0] : vector<8x128xf32> to vector<128xf32>
    %20 = vector.shape_cast %19 : vector<128xf32> to vector<1x128xf32>
    %cst_15 = arith.constant 8.000000e+00 : f32
    %21 = vector.broadcast %cst_15 : f32 to vector<1x128xf32>
    %22 = arith.divf %20, %21 : vector<1x128xf32>
    %23 = vector.broadcast %22 : vector<1x128xf32> to vector<8x128xf32>
    %24 = arith.subf %18, %23 : vector<8x128xf32>
    %25 = arith.mulf %24, %24 : vector<8x128xf32>
    %cst_16 = arith.constant dense<0.000000e+00> : vector<128xf32>
    %26 = vector.multi_reduction <add>, %25, %cst_16 [0] : vector<8x128xf32> to vector<128xf32>
    %27 = vector.shape_cast %26 : vector<128xf32> to vector<1x128xf32>
    %cst_17 = arith.constant 8.000000e+00 : f32
    %28 = vector.broadcast %cst_17 : f32 to vector<1x128xf32>
    %29 = arith.divf %27, %28 : vector<1x128xf32>
    %cst_18 = arith.constant 9.99999974E-6 : f32
    %30 = vector.broadcast %cst_18 : f32 to vector<1x128xf32>
    %31 = arith.addf %29, %30 : vector<1x128xf32>
    %32 = math.rsqrt %31 : vector<1x128xf32>
    %33 = arith.mulf %11, %32 : vector<1x128xf32>
    %34 = vector.broadcast %33 : vector<1x128xf32> to vector<8x128xf32>
    %35 = arith.mulf %24, %34 : vector<8x128xf32>
    %36 = vector.broadcast %12 : vector<1x128xf32> to vector<8x128xf32>
    %37 = arith.addf %35, %36 : vector<8x128xf32>
    %38 = vector.extract_strided_slice %37 {offsets = [0, 0], sizes = [8, 32], strides = [1, 1]} : vector<8x128xf32> to vector<8x32xf32>
    %c1 = arith.constant 1 : index
    %c0_19 = arith.constant 0 : index
    %c0_20 = arith.constant 0 : index
    %39 = vector.load %arg1[%c1, %c0_19, %c0_20] : memref<6x40x128xbf16, #tpu.memory_space<vmem>>, vector<1x32x128xbf16>
    %40 = vector.shape_cast %39 : vector<1x32x128xbf16> to vector<32x128xbf16>
    %c1_21 = arith.constant 1 : index
    %c32_22 = arith.constant 32 : index
    %c0_23 = arith.constant 0 : index
    %41 = vector.load %arg1[%c1_21, %c32_22, %c0_23] : memref<6x40x128xbf16, #tpu.memory_space<vmem>>, vector<1x3x128xbf16>
    %42 = vector.shape_cast %41 : vector<1x3x128xbf16> to vector<3x128xbf16>
    %43 = arith.extf %42 : vector<3x128xbf16> to vector<3x128xf32>
    %44 = vector.extract_strided_slice %43 {offsets = [0, 0], sizes = [1, 128], strides = [1, 1]} : vector<3x128xf32> to vector<1x128xf32>
    %45 = vector.extract_strided_slice %43 {offsets = [1, 0], sizes = [1, 128], strides = [1, 1]} : vector<3x128xf32> to vector<1x128xf32>
    %46 = vector.extract_strided_slice %43 {offsets = [2, 0], sizes = [1, 128], strides = [1, 1]} : vector<3x128xf32> to vector<1x128xf32>
    %47 = arith.truncf %38 : vector<8x32xf32> to vector<8x32xbf16>
    %cst_24 = arith.constant dense<0.000000e+00> : vector<8x128xf32>
    %48 = tpu.matmul %47, %40, %cst_24 {dimension_numbers = #tpu.dot_dimension_numbers<[1], [0], [0], [1], [0, 0, 1, 1], [], []>} : vector<8x32xbf16>, vector<32x128xbf16>, vector<8x128xf32> -> vector<8x128xf32>
    %49 = vector.broadcast %44 : vector<1x128xf32> to vector<8x128xf32>
    %50 = arith.addf %48, %49 : vector<8x128xf32>
    %cst_25 = arith.constant 0.000000e+00 : f32
    %51 = vector.broadcast %cst_25 : f32 to vector<8x128xf32>
    %52 = arith.maximumf %50, %51 : vector<8x128xf32>
    %cst_26 = arith.constant dense<0.000000e+00> : vector<128xf32>
    %53 = vector.multi_reduction <add>, %52, %cst_26 [0] : vector<8x128xf32> to vector<128xf32>
    %54 = vector.shape_cast %53 : vector<128xf32> to vector<1x128xf32>
    %cst_27 = arith.constant 8.000000e+00 : f32
    %55 = vector.broadcast %cst_27 : f32 to vector<1x128xf32>
    %56 = arith.divf %54, %55 : vector<1x128xf32>
    %57 = vector.broadcast %56 : vector<1x128xf32> to vector<8x128xf32>
    %58 = arith.subf %52, %57 : vector<8x128xf32>
    %59 = arith.mulf %58, %58 : vector<8x128xf32>
    %cst_28 = arith.constant dense<0.000000e+00> : vector<128xf32>
    %60 = vector.multi_reduction <add>, %59, %cst_28 [0] : vector<8x128xf32> to vector<128xf32>
    %61 = vector.shape_cast %60 : vector<128xf32> to vector<1x128xf32>
    %cst_29 = arith.constant 8.000000e+00 : f32
    %62 = vector.broadcast %cst_29 : f32 to vector<1x128xf32>
    %63 = arith.divf %61, %62 : vector<1x128xf32>
    %cst_30 = arith.constant 9.99999974E-6 : f32
    %64 = vector.broadcast %cst_30 : f32 to vector<1x128xf32>
    %65 = arith.addf %63, %64 : vector<1x128xf32>
    %66 = math.rsqrt %65 : vector<1x128xf32>
    %67 = arith.mulf %45, %66 : vector<1x128xf32>
    %68 = vector.broadcast %67 : vector<1x128xf32> to vector<8x128xf32>
    %69 = arith.mulf %58, %68 : vector<8x128xf32>
    %70 = vector.broadcast %46 : vector<1x128xf32> to vector<8x128xf32>
    %71 = arith.addf %69, %70 : vector<8x128xf32>
    %72 = vector.extract_strided_slice %71 {offsets = [0, 0], sizes = [8, 32], strides = [1, 1]} : vector<8x128xf32> to vector<8x32xf32>
    %c2 = arith.constant 2 : index
    %c0_31 = arith.constant 0 : index
    %c0_32 = arith.constant 0 : index
    %73 = vector.load %arg1[%c2, %c0_31, %c0_32] : memref<6x40x128xbf16, #tpu.memory_space<vmem>>, vector<1x32x128xbf16>
    %74 = vector.shape_cast %73 : vector<1x32x128xbf16> to vector<32x128xbf16>
    %c2_33 = arith.constant 2 : index
    %c32_34 = arith.constant 32 : index
    %c0_35 = arith.constant 0 : index
    %75 = vector.load %arg1[%c2_33, %c32_34, %c0_35] : memref<6x40x128xbf16, #tpu.memory_space<vmem>>, vector<1x3x128xbf16>
    %76 = vector.shape_cast %75 : vector<1x3x128xbf16> to vector<3x128xbf16>
    %77 = arith.extf %76 : vector<3x128xbf16> to vector<3x128xf32>
    %78 = vector.extract_strided_slice %77 {offsets = [0, 0], sizes = [1, 128], strides = [1, 1]} : vector<3x128xf32> to vector<1x128xf32>
    %79 = vector.extract_strided_slice %77 {offsets = [1, 0], sizes = [1, 128], strides = [1, 1]} : vector<3x128xf32> to vector<1x128xf32>
    %80 = vector.extract_strided_slice %77 {offsets = [2, 0], sizes = [1, 128], strides = [1, 1]} : vector<3x128xf32> to vector<1x128xf32>
    %81 = arith.truncf %72 : vector<8x32xf32> to vector<8x32xbf16>
    %cst_36 = arith.constant dense<0.000000e+00> : vector<8x128xf32>
    %82 = tpu.matmul %81, %74, %cst_36 {dimension_numbers = #tpu.dot_dimension_numbers<[1], [0], [0], [1], [0, 0, 1, 1], [], []>} : vector<8x32xbf16>, vector<32x128xbf16>, vector<8x128xf32> -> vector<8x128xf32>
    %83 = vector.broadcast %78 : vector<1x128xf32> to vector<8x128xf32>
    %84 = arith.addf %82, %83 : vector<8x128xf32>
    %cst_37 = arith.constant 0.000000e+00 : f32
    %85 = vector.broadcast %cst_37 : f32 to vector<8x128xf32>
    %86 = arith.maximumf %84, %85 : vector<8x128xf32>
    %cst_38 = arith.constant dense<0.000000e+00> : vector<128xf32>
    %87 = vector.multi_reduction <add>, %86, %cst_38 [0] : vector<8x128xf32> to vector<128xf32>
    %88 = vector.shape_cast %87 : vector<128xf32> to vector<1x128xf32>
    %cst_39 = arith.constant 8.000000e+00 : f32
    %89 = vector.broadcast %cst_39 : f32 to vector<1x128xf32>
    %90 = arith.divf %88, %89 : vector<1x128xf32>
    %91 = vector.broadcast %90 : vector<1x128xf32> to vector<8x128xf32>
    %92 = arith.subf %86, %91 : vector<8x128xf32>
    %93 = arith.mulf %92, %92 : vector<8x128xf32>
    %cst_40 = arith.constant dense<0.000000e+00> : vector<128xf32>
    %94 = vector.multi_reduction <add>, %93, %cst_40 [0] : vector<8x128xf32> to vector<128xf32>
    %95 = vector.shape_cast %94 : vector<128xf32> to vector<1x128xf32>
    %cst_41 = arith.constant 8.000000e+00 : f32
    %96 = vector.broadcast %cst_41 : f32 to vector<1x128xf32>
    %97 = arith.divf %95, %96 : vector<1x128xf32>
    %cst_42 = arith.constant 9.99999974E-6 : f32
    %98 = vector.broadcast %cst_42 : f32 to vector<1x128xf32>
    %99 = arith.addf %97, %98 : vector<1x128xf32>
    %100 = math.rsqrt %99 : vector<1x128xf32>
    %101 = arith.mulf %79, %100 : vector<1x128xf32>
    %102 = vector.broadcast %101 : vector<1x128xf32> to vector<8x128xf32>
    %103 = arith.mulf %92, %102 : vector<8x128xf32>
    %104 = vector.broadcast %80 : vector<1x128xf32> to vector<8x128xf32>
    %105 = arith.addf %103, %104 : vector<8x128xf32>
    %106 = vector.extract_strided_slice %105 {offsets = [0, 0], sizes = [8, 32], strides = [1, 1]} : vector<8x128xf32> to vector<8x32xf32>
    %c3 = arith.constant 3 : index
    %c0_43 = arith.constant 0 : index
    %c0_44 = arith.constant 0 : index
    %107 = vector.load %arg1[%c3, %c0_43, %c0_44] : memref<6x40x128xbf16, #tpu.memory_space<vmem>>, vector<1x32x128xbf16>
    %108 = vector.shape_cast %107 : vector<1x32x128xbf16> to vector<32x128xbf16>
    %c3_45 = arith.constant 3 : index
    %c32_46 = arith.constant 32 : index
    %c0_47 = arith.constant 0 : index
    %109 = vector.load %arg1[%c3_45, %c32_46, %c0_47] : memref<6x40x128xbf16, #tpu.memory_space<vmem>>, vector<1x3x128xbf16>
    %110 = vector.shape_cast %109 : vector<1x3x128xbf16> to vector<3x128xbf16>
    %111 = arith.extf %110 : vector<3x128xbf16> to vector<3x128xf32>
    %112 = vector.extract_strided_slice %111 {offsets = [0, 0], sizes = [1, 128], strides = [1, 1]} : vector<3x128xf32> to vector<1x128xf32>
    %113 = vector.extract_strided_slice %111 {offsets = [1, 0], sizes = [1, 128], strides = [1, 1]} : vector<3x128xf32> to vector<1x128xf32>
    %114 = vector.extract_strided_slice %111 {offsets = [2, 0], sizes = [1, 128], strides = [1, 1]} : vector<3x128xf32> to vector<1x128xf32>
    %115 = arith.truncf %106 : vector<8x32xf32> to vector<8x32xbf16>
    %cst_48 = arith.constant dense<0.000000e+00> : vector<8x128xf32>
    %116 = tpu.matmul %115, %108, %cst_48 {dimension_numbers = #tpu.dot_dimension_numbers<[1], [0], [0], [1], [0, 0, 1, 1], [], []>} : vector<8x32xbf16>, vector<32x128xbf16>, vector<8x128xf32> -> vector<8x128xf32>
    %117 = vector.broadcast %112 : vector<1x128xf32> to vector<8x128xf32>
    %118 = arith.addf %116, %117 : vector<8x128xf32>
    %cst_49 = arith.constant 0.000000e+00 : f32
    %119 = vector.broadcast %cst_49 : f32 to vector<8x128xf32>
    %120 = arith.maximumf %118, %119 : vector<8x128xf32>
    %cst_50 = arith.constant dense<0.000000e+00> : vector<128xf32>
    %121 = vector.multi_reduction <add>, %120, %cst_50 [0] : vector<8x128xf32> to vector<128xf32>
    %122 = vector.shape_cast %121 : vector<128xf32> to vector<1x128xf32>
    %cst_51 = arith.constant 8.000000e+00 : f32
    %123 = vector.broadcast %cst_51 : f32 to vector<1x128xf32>
    %124 = arith.divf %122, %123 : vector<1x128xf32>
    %125 = vector.broadcast %124 : vector<1x128xf32> to vector<8x128xf32>
    %126 = arith.subf %120, %125 : vector<8x128xf32>
    %127 = arith.mulf %126, %126 : vector<8x128xf32>
    %cst_52 = arith.constant dense<0.000000e+00> : vector<128xf32>
    %128 = vector.multi_reduction <add>, %127, %cst_52 [0] : vector<8x128xf32> to vector<128xf32>
    %129 = vector.shape_cast %128 : vector<128xf32> to vector<1x128xf32>
    %cst_53 = arith.constant 8.000000e+00 : f32
    %130 = vector.broadcast %cst_53 : f32 to vector<1x128xf32>
    %131 = arith.divf %129, %130 : vector<1x128xf32>
    %cst_54 = arith.constant 9.99999974E-6 : f32
    %132 = vector.broadcast %cst_54 : f32 to vector<1x128xf32>
    %133 = arith.addf %131, %132 : vector<1x128xf32>
    %134 = math.rsqrt %133 : vector<1x128xf32>
    %135 = arith.mulf %113, %134 : vector<1x128xf32>
    %136 = vector.broadcast %135 : vector<1x128xf32> to vector<8x128xf32>
    %137 = arith.mulf %126, %136 : vector<8x128xf32>
    %138 = vector.broadcast %114 : vector<1x128xf32> to vector<8x128xf32>
    %139 = arith.addf %137, %138 : vector<8x128xf32>
    %140 = vector.extract_strided_slice %139 {offsets = [0, 0], sizes = [8, 32], strides = [1, 1]} : vector<8x128xf32> to vector<8x32xf32>
    %c4 = arith.constant 4 : index
    %c0_55 = arith.constant 0 : index
    %c0_56 = arith.constant 0 : index
    %141 = vector.load %arg1[%c4, %c0_55, %c0_56] : memref<6x40x128xbf16, #tpu.memory_space<vmem>>, vector<1x32x128xbf16>
    %142 = vector.shape_cast %141 : vector<1x32x128xbf16> to vector<32x128xbf16>
    %c4_57 = arith.constant 4 : index
    %c32_58 = arith.constant 32 : index
    %c0_59 = arith.constant 0 : index
    %143 = vector.load %arg1[%c4_57, %c32_58, %c0_59] : memref<6x40x128xbf16, #tpu.memory_space<vmem>>, vector<1x3x128xbf16>
    %144 = vector.shape_cast %143 : vector<1x3x128xbf16> to vector<3x128xbf16>
    %145 = arith.extf %144 : vector<3x128xbf16> to vector<3x128xf32>
    %146 = vector.extract_strided_slice %145 {offsets = [0, 0], sizes = [1, 128], strides = [1, 1]} : vector<3x128xf32> to vector<1x128xf32>
    %147 = vector.extract_strided_slice %145 {offsets = [1, 0], sizes = [1, 128], strides = [1, 1]} : vector<3x128xf32> to vector<1x128xf32>
    %148 = vector.extract_strided_slice %145 {offsets = [2, 0], sizes = [1, 128], strides = [1, 1]} : vector<3x128xf32> to vector<1x128xf32>
    %149 = arith.truncf %140 : vector<8x32xf32> to vector<8x32xbf16>
    %cst_60 = arith.constant dense<0.000000e+00> : vector<8x128xf32>
    %150 = tpu.matmul %149, %142, %cst_60 {dimension_numbers = #tpu.dot_dimension_numbers<[1], [0], [0], [1], [0, 0, 1, 1], [], []>} : vector<8x32xbf16>, vector<32x128xbf16>, vector<8x128xf32> -> vector<8x128xf32>
    %151 = vector.broadcast %146 : vector<1x128xf32> to vector<8x128xf32>
    %152 = arith.addf %150, %151 : vector<8x128xf32>
    %cst_61 = arith.constant 0.000000e+00 : f32
    %153 = vector.broadcast %cst_61 : f32 to vector<8x128xf32>
    %154 = arith.maximumf %152, %153 : vector<8x128xf32>
    %cst_62 = arith.constant dense<0.000000e+00> : vector<128xf32>
    %155 = vector.multi_reduction <add>, %154, %cst_62 [0] : vector<8x128xf32> to vector<128xf32>
    %156 = vector.shape_cast %155 : vector<128xf32> to vector<1x128xf32>
    %cst_63 = arith.constant 8.000000e+00 : f32
    %157 = vector.broadcast %cst_63 : f32 to vector<1x128xf32>
    %158 = arith.divf %156, %157 : vector<1x128xf32>
    %159 = vector.broadcast %158 : vector<1x128xf32> to vector<8x128xf32>
    %160 = arith.subf %154, %159 : vector<8x128xf32>
    %161 = arith.mulf %160, %160 : vector<8x128xf32>
    %cst_64 = arith.constant dense<0.000000e+00> : vector<128xf32>
    %162 = vector.multi_reduction <add>, %161, %cst_64 [0] : vector<8x128xf32> to vector<128xf32>
    %163 = vector.shape_cast %162 : vector<128xf32> to vector<1x128xf32>
    %cst_65 = arith.constant 8.000000e+00 : f32
    %164 = vector.broadcast %cst_65 : f32 to vector<1x128xf32>
    %165 = arith.divf %163, %164 : vector<1x128xf32>
    %cst_66 = arith.constant 9.99999974E-6 : f32
    %166 = vector.broadcast %cst_66 : f32 to vector<1x128xf32>
    %167 = arith.addf %165, %166 : vector<1x128xf32>
    %168 = math.rsqrt %167 : vector<1x128xf32>
    %169 = arith.mulf %147, %168 : vector<1x128xf32>
    %170 = vector.broadcast %169 : vector<1x128xf32> to vector<8x128xf32>
    %171 = arith.mulf %160, %170 : vector<8x128xf32>
    %172 = vector.broadcast %148 : vector<1x128xf32> to vector<8x128xf32>
    %173 = arith.addf %171, %172 : vector<8x128xf32>
    %174 = vector.extract_strided_slice %173 {offsets = [0, 0], sizes = [8, 32], strides = [1, 1]} : vector<8x128xf32> to vector<8x32xf32>
    %c5 = arith.constant 5 : index
    %c0_67 = arith.constant 0 : index
    %c0_68 = arith.constant 0 : index
    %175 = vector.load %arg1[%c5, %c0_67, %c0_68] : memref<6x40x128xbf16, #tpu.memory_space<vmem>>, vector<1x32x128xbf16>
    %176 = vector.shape_cast %175 : vector<1x32x128xbf16> to vector<32x128xbf16>
    %c5_69 = arith.constant 5 : index
    %c32_70 = arith.constant 32 : index
    %c0_71 = arith.constant 0 : index
    %177 = vector.load %arg1[%c5_69, %c32_70, %c0_71] : memref<6x40x128xbf16, #tpu.memory_space<vmem>>, vector<1x1x128xbf16>
    %178 = vector.shape_cast %177 : vector<1x1x128xbf16> to vector<1x128xbf16>
    %179 = arith.extf %178 : vector<1x128xbf16> to vector<1x128xf32>
    %180 = arith.truncf %174 : vector<8x32xf32> to vector<8x32xbf16>
    %cst_72 = arith.constant dense<0.000000e+00> : vector<8x128xf32>
    %181 = tpu.matmul %180, %176, %cst_72 {dimension_numbers = #tpu.dot_dimension_numbers<[1], [0], [0], [1], [0, 0, 1, 1], [], []>} : vector<8x32xbf16>, vector<32x128xbf16>, vector<8x128xf32> -> vector<8x128xf32>
    %182 = vector.broadcast %179 : vector<1x128xf32> to vector<8x128xf32>
    %183 = arith.addf %181, %182 : vector<8x128xf32>
    %c0_73 = arith.constant 0 : index
    %c0_74 = arith.constant 0 : index
    %184 = vector.load %arg2[%c0_73, %c0_74] : memref<8x128xf32, #tpu.memory_space<vmem>>, vector<8x128xf32>
    tpu.vector_store %arg2[%c0_73, %c0_74], %183 {strides = array<i32>} : memref<8x128xf32, #tpu.memory_space<vmem>>, vector<8x128xf32>,
    return
  }
}

</mosaic_0001>

<bundles_post_ra>
// kernel: mymodel1_forward.1
= control target key start
LH: loop header
LB: loop body
LE: loop exit
PB: predicated region body
PF: predicated region fallthrough
CT: control target
= control target key end

     0   :  { %7 = vsyncpa [#allocation4], 0  ;;  %s674_s0 = inlined_call_operand.hbm [shape: f32[8,5], index: 0, kind: input, shape index: {}]   ;;  %s675_s1 = inlined_call_operand.hbm [shape: bf16[6,40,128], index: 1, kind: input, shape index: {}]   ;;  %s676_s2 = inlined_call_operand.hbm [shape: f32[8,128], index: 2, kind: output, shape index: {}]  }
   0x1   :  { %8 = vsyncpa [#allocation7], 0 }
   0x2   :  { %9 = vsyncpa [#allocation5], 0  ;;  %s15_s11 = sshll.u32 %s674_s0, 4  ;;  %s624_s12 = smov [#allocation3]   ;;  %s16_s11 = int_to_ptr.hbm [resolvable:$true] %s15_s11 }
   0x3   :  { %s17_s13 = sshll.u32 %s624_s12, 4  ;;  %s25_s16 = sshll.u32 %s675_s1, 4  ;;  %s18_s13 = int_to_ptr.vmem [resolvable:$true] %s17_s13  ;;  %s26_s16 = int_to_ptr.hbm [resolvable:$true] %s25_s16 }
   0x4   :  { %20 = dma.hbm_to_vmem [thread:$0]  %s16_s11, 128, %s18_s13, [#allocation4]  }
   0x5   :  { %s625_s17 = smov [#allocation6]   ;;  %s626_s19 = smov 64  }
   0x6   :  { %s27_s18 = sshll.u32 %s625_s17, 4  ;;  %s627_s20 = smov 4   ;;  %s28_s18 = int_to_ptr.vmem [resolvable:$true] %s27_s18 }
   0x7   :  { %33 = dma.hbm_to_vmem [thread:$0]  %s26_s16, 1920, %s28_s18, [#allocation7], %s626_s19, %s626_s19, %s627_s20  }
   0x8   :  { %618 = dma.done.wait [#allocation4], 128  }
   0x9   :  { %619 = vsyncadd [#allocation4], 4294967168 }
   0xa   :  { %620 = dma.done.wait [#allocation7], 1920  }
   0xb   :  { %621 = vsyncadd [#allocation7], 4294965376  ;;  %vm43_vm0 = vcmask 261120   ;;  %v628_v0 = vmov 0.0   ;;  %vm46_vm1 = vcmask 39936   ;;  %v516_v1 = vld [vmem:[#allocation6 + $0x8] sm:$0xff] }
   0xc   :  { %44 = vst.msk [vmem:[#allocation2] sm:$0xff] %vm43_vm0, %v628_v0  ;;  %v45_v2 = vld [vmem:[#allocation3] sm:$0xff]  ;;  %78 = vmatpush.bf16.msra.mxu0 %v516_v1  ;;  %v515_v3 = vld [vmem:[#allocation6] sm:$0xff]  ;;  %v629_v6 = vmov 8.0   ;;  %v53_v7 = vld [vmem:[#allocation6 + $0x10] sm:$0x3] }
   0xd   :  { %47 = vst.msk [vmem:[#allocation2] sm:$0xff] %vm46_vm1, %v45_v2  ;;  %534 = vrcp.f32 %v629_v6  ;;  %v54_v8 = vunpack.c.l.bf16 %v53_v7  ;;  %v518_v19 = vld [vmem:[#allocation6 + $0x1c] sm:$0xff]  ;;  %v517_v22 = vld [vmem:[#allocation6 + $0x14] sm:$0xff]  ;;  %v130_v52 = vld [vmem:[#allocation6 + $0x24] sm:$0x3]  ;;  %s630_s0 = smov [#allocation8]  }
   0xe   :  { %155 = vmatpush.bf16.msra.mxu1 %v518_v19  ;;  %v131_v53 = vunpack.c.l.bf16 %v130_v52  ;;  %v520_v60 = vld [vmem:[#allocation6 + $0x30] sm:$0xff]  ;;  %v519_v63 = vld [vmem:[#allocation6 + $0x28] sm:$0xff]  ;;  %s448_s1 = sshll.u32 %s630_s0, 4  ;;  %s450_s23 = sshll.u32 %s676_s2, 4  ;;  %s449_s1 = int_to_ptr.vmem [resolvable:$true] %s448_s1  ;;  %s451_s23 = int_to_ptr.hbm [resolvable:$true] %s450_s23 }
   0xf   :  { %v56_v10 = vperm.slane %v54_v8, 0  ;;  %v123_v48 = vperm.slane %v54_v8, 2  ;;  %225 = vmatpush.bf16.msra.mxu2 %v520_v60 }
  0x10   :  { %79 = vmatpush.bf16.msra.mxu0 %v515_v3  ;;  %v133_v54 = vperm.slane %v131_v53, 0 }
  0x12   :  { %156 = vmatpush.bf16.msra.mxu1 %v517_v22 }
  0x13   :  { %v535_v9 = vpop.eup %534  ;;  %226 = vmatpush.bf16.msra.mxu2 %v519_v63 }
  0x14   :  { %v48_v4 = vld [vmem:[#allocation2] sm:$0xff]  ;;  %v93_v11 = vmul.f32 8.0, %v535_v9  ;;  %vm97_vm2 = vweird.f32 %v535_v9 }
  0x15   :  { %v55_v5 = vpack.c.bf16 %v48_v4, %v48_v4 }
  0x16   :  { %v94_v14 = vsub.f32 1.0, %v93_v11 }
  0x17   :  { %469 = vmatmul.msk.bf16.vlgmr.msra.gmra.mxu0 %vm43_vm0, %v55_v5 }
  0x18   :  { %v95_v17 = vmul.f32 %v535_v9, %v94_v14 }
  0x1a   :  { %v96_v23 = vadd.f32 %v535_v9, %v95_v17 }
  0x1c   :  { %v654_v26 = vsel %vm97_vm2, %v535_v9, %v96_v23  ;;  %v193_v23 = vperm.slane %v131_v53, 2 }
  0x94   :  { %v81_v12 = vpop.f32.mrf.mxu0 }
  0x95   :  { %v82_v13 = vadd.f32 %v81_v12, %v56_v10 }
  0x97   :  { %v85_v15 = vmax.f32 %v82_v13, 0.0 }
  0x99   :  { %v86_v16 = vrot.slane %v85_v15, 4 }
  0x9b   :  { %v87_v18 = vadd.f32 %v86_v16, %v85_v15 }
  0x9c   :  { %v83_v20 = vpop.f32.mrf.mxu0 }
  0x9d   :  { %v88_v21 = vrot.slane %v87_v18, 2 }
  0x9f   :  { %v89_v24 = vadd.f32 %v88_v21, %v87_v18 }
  0xa1   :  { %v90_v25 = vrot.slane %v89_v24, 1 }
  0xa3   :  { %v91_v27 = vadd.f32 %v90_v25, %v89_v24 }
  0xa5   :  { %v99_v28 = vmul.f32 %v654_v26, %v91_v27 }
  0xa7   :  { %v100_v29 = vsub.f32 %v85_v15, %v99_v28  ;;  %v200_v28 = vld [vmem:[#allocation6 + $0x38] sm:$0x3] }
  0xa9   :  { %v101_v30 = vmul.f32 %v100_v29, %v100_v29 }
  0xab   :  { %v102_v31 = vrot.slane %v101_v30, 4 }
  0xad   :  { %v103_v32 = vadd.f32 %v102_v31, %v101_v30 }
  0xaf   :  { %v104_v33 = vrot.slane %v103_v32, 2 }
  0xb1   :  { %v105_v34 = vadd.f32 %v104_v33, %v103_v32 }
  0xb3   :  { %v106_v35 = vrot.slane %v105_v34, 1 }
  0xb5   :  { %v107_v36 = vadd.f32 %v106_v35, %v105_v34 }
  0xb7   :  { %v108_v37 = vmul.f32 %v107_v36, %v654_v26  ;;  %v522_v36 = vld [vmem:[#allocation6 + $0x44] sm:$0xff] }
  0xb8   :  { %295 = vmatpush.bf16.msra.mxu3 %v522_v36 }
  0xb9   :  { %v109_v38 = vadd.f32 1e-05, %v108_v37 }
  0xbb   :  { %536 = vrsqrt.f32 %v109_v38  ;;  %vm116_vm4 = vweird.f32 %v109_v38 }
  0xc1   :  { %v537_v39 = vpop.eup %536 }
  0xc2   :  { %v111_v40 = vmul.f32 %v537_v39, %v109_v38  ;;  %vm117_vm3 = vweird.f32 %v537_v39 }
  0xc3   :  { %vm118_vm5 = vmor %vm116_vm4, %vm117_vm3 }
  0xc4   :  { %v112_v41 = vmul.f32 %v537_v39, %v111_v40 }
  0xc6   :  { %v113_v42 = vmul.f32 0.5, %v112_v41 }
  0xc8   :  { %v114_v43 = vsub.f32 1.5, %v113_v42 }
  0xca   :  { %v115_v44 = vmul.f32 %v537_v39, %v114_v43 }
  0xcc   :  { %v119_v45 = vsel %vm118_vm5, %v537_v39, %v115_v44  ;;  %v521_v39 = vld [vmem:[#allocation6 + $0x3c] sm:$0xff] }
  0xcd   :  { %v120_v46 = vmul.f32 %v119_v45, %v54_v8  ;;  %296 = vmatpush.bf16.msra.mxu3 %v521_v39 }
  0xcf   :  { %v121_v47 = vperm.slane %v120_v46, 1 }
  0xd1   :  { %v122_v49 = vmul.f32 %v121_v47, %v100_v29  ;;  %v201_v29 = vunpack.c.l.bf16 %v200_v28 }
  0xd3   :  { %v124_v50 = vadd.f32 %v123_v48, %v122_v49  ;;  %v203_v30 = vperm.slane %v201_v29, 0  ;;  %v263_v63 = vperm.slane %v201_v29, 2 }
  0xd5   :  { %v132_v51 = vpack.c.bf16 %v124_v50, %v124_v50 }
  0xd7   :  { %478 = vmatmul.msk.bf16.vlgmr.msra.gmra.mxu1 %vm43_vm0, %v132_v51 }
 0x154   :  { %v158_v55 = vpop.f32.mrf.mxu1 }
 0x155   :  { %v159_v56 = vadd.f32 %v158_v55, %v133_v54 }
 0x157   :  { %v162_v57 = vmax.f32 %v159_v56, 0.0 }
 0x159   :  { %v163_v58 = vrot.slane %v162_v57, 4 }
 0x15b   :  { %v164_v59 = vadd.f32 %v163_v58, %v162_v57 }
 0x15c   :  { %v160_v61 = vpop.f32.mrf.mxu1 }
 0x15d   :  { %v165_v62 = vrot.slane %v164_v59, 2 }
 0x15f   :  { %v166_v0 = vadd.f32 %v165_v62, %v164_v59 }
 0x161   :  { %v167_v1 = vrot.slane %v166_v0, 1 }
 0x163   :  { %v168_v2 = vadd.f32 %v167_v1, %v166_v0 }
 0x165   :  { %v169_v3 = vmul.f32 %v168_v2, %v654_v26 }
 0x167   :  { %v170_v4 = vsub.f32 %v162_v57, %v169_v3  ;;  %v270_v3 = vld [vmem:[#allocation6 + $0x4c] sm:$0x3] }
 0x169   :  { %v171_v5 = vmul.f32 %v170_v4, %v170_v4 }
 0x16b   :  { %v172_v6 = vrot.slane %v171_v5, 4 }
 0x16d   :  { %v173_v7 = vadd.f32 %v172_v6, %v171_v5 }
 0x16f   :  { %v174_v8 = vrot.slane %v173_v7, 2 }
 0x171   :  { %v175_v9 = vadd.f32 %v174_v8, %v173_v7 }
 0x173   :  { %v176_v10 = vrot.slane %v175_v9, 1 }
 0x175   :  { %v177_v11 = vadd.f32 %v176_v10, %v175_v9 }
 0x177   :  { %v178_v12 = vmul.f32 %v177_v11, %v654_v26 }
 0x179   :  { %v179_v13 = vadd.f32 1e-05, %v178_v12 }
 0x17b   :  { %538 = vrsqrt.f32 %v179_v13  ;;  %vm186_vm7 = vweird.f32 %v179_v13 }
 0x181   :  { %v539_v14 = vpop.eup %538 }
 0x182   :  { %v181_v15 = vmul.f32 %v539_v14, %v179_v13  ;;  %vm187_vm6 = vweird.f32 %v539_v14 }
 0x183   :  { %vm188_vm8 = vmor %vm186_vm7, %vm187_vm6 }
 0x184   :  { %v182_v16 = vmul.f32 %v539_v14, %v181_v15 }
 0x186   :  { %v183_v17 = vmul.f32 0.5, %v182_v16 }
 0x188   :  { %v184_v18 = vsub.f32 1.5, %v183_v17 }
 0x18a   :  { %v185_v19 = vmul.f32 %v539_v14, %v184_v18 }
 0x18c   :  { %v189_v20 = vsel %vm188_vm8, %v539_v14, %v185_v19 }
 0x18d   :  { %v190_v21 = vmul.f32 %v189_v20, %v131_v53 }
 0x18f   :  { %v191_v22 = vperm.slane %v190_v21, 1  ;;  %v524_v21 = vld [vmem:[#allocation6 + $0x58] sm:$0xff] }
 0x190   :  { %365 = vmatpush.bf16.msrb.mxu0 %v524_v21 }
 0x191   :  { %v192_v24 = vmul.f32 %v191_v22, %v170_v4  ;;  %v271_v4 = vunpack.c.l.bf16 %v270_v3 }
 0x193   :  { %v194_v25 = vadd.f32 %v193_v23, %v192_v24  ;;  %v273_v5 = vperm.slane %v271_v4, 0  ;;  %v523_v24 = vld [vmem:[#allocation6 + $0x50] sm:$0xff]  ;;  %v333_v39 = vperm.slane %v271_v4, 2 }
 0x194   :  { %366 = vmatpush.bf16.msrb.mxu0 %v523_v24 }
 0x195   :  { %v202_v27 = vpack.c.bf16 %v194_v25, %v194_v25 }
 0x197   :  { %487 = vmatmul.msk.bf16.vlgmr.msra.gmra.mxu2 %vm43_vm0, %v202_v27 }
 0x21a   :  { %v228_v31 = vpop.f32.mrf.mxu2 }
 0x21b   :  { %v229_v32 = vadd.f32 %v228_v31, %v203_v30 }
 0x21d   :  { %v232_v33 = vmax.f32 %v229_v32, 0.0 }
 0x21f   :  { %v233_v34 = vrot.slane %v232_v33, 4 }
 0x221   :  { %v234_v35 = vadd.f32 %v233_v34, %v232_v33 }
 0x222   :  { %v230_v37 = vpop.f32.mrf.mxu2 }
 0x223   :  { %v235_v38 = vrot.slane %v234_v35, 2 }
 0x225   :  { %v236_v40 = vadd.f32 %v235_v38, %v234_v35 }
 0x227   :  { %v237_v41 = vrot.slane %v236_v40, 1 }
 0x229   :  { %v238_v42 = vadd.f32 %v237_v41, %v236_v40 }
 0x22b   :  { %v239_v43 = vmul.f32 %v238_v42, %v654_v26 }
 0x22d   :  { %v240_v44 = vsub.f32 %v232_v33, %v239_v43  ;;  %v340_v43 = vld [vmem:[#allocation6 + $0x60] sm:$0x3] }
 0x22f   :  { %v241_v45 = vmul.f32 %v240_v44, %v240_v44 }
 0x231   :  { %v242_v46 = vrot.slane %v241_v45, 4 }
 0x233   :  { %v243_v47 = vadd.f32 %v242_v46, %v241_v45 }
 0x235   :  { %v244_v48 = vrot.slane %v243_v47, 2 }
 0x237   :  { %v245_v49 = vadd.f32 %v244_v48, %v243_v47 }
 0x239   :  { %v246_v50 = vrot.slane %v245_v49, 1 }
 0x23b   :  { %v247_v51 = vadd.f32 %v246_v50, %v245_v49 }
 0x23d   :  { %v248_v52 = vmul.f32 %v247_v51, %v654_v26 }
 0x23f   :  { %v249_v53 = vadd.f32 1e-05, %v248_v52 }
 0x241   :  { %540 = vrsqrt.f32 %v249_v53  ;;  %vm256_vm10 = vweird.f32 %v249_v53 }
 0x247   :  { %v541_v54 = vpop.eup %540 }
 0x248   :  { %v251_v55 = vmul.f32 %v541_v54, %v249_v53  ;;  %vm257_vm9 = vweird.f32 %v541_v54 }
 0x249   :  { %vm258_vm11 = vmor %vm256_vm10, %vm257_vm9 }
 0x24a   :  { %v252_v56 = vmul.f32 %v541_v54, %v251_v55 }
 0x24c   :  { %v253_v57 = vmul.f32 0.5, %v252_v56 }
 0x24e   :  { %v254_v58 = vsub.f32 1.5, %v253_v57 }
 0x250   :  { %v255_v59 = vmul.f32 %v541_v54, %v254_v58 }
 0x252   :  { %v259_v60 = vsel %vm258_vm11, %v541_v54, %v255_v59 }
 0x253   :  { %v260_v61 = vmul.f32 %v259_v60, %v201_v29 }
 0x255   :  { %v261_v62 = vperm.slane %v260_v61, 1  ;;  %v526_v61 = vld [vmem:[#allocation6 + $0x6c] sm:$0xff] }
 0x256   :  { %435 = vmatpush.bf16.msrb.mxu1 %v526_v61 }
 0x257   :  { %v262_v0 = vmul.f32 %v261_v62, %v240_v44  ;;  %v341_v44 = vunpack.c.l.bf16 %v340_v43 }
 0x259   :  { %v264_v1 = vadd.f32 %v263_v63, %v262_v0  ;;  %v343_v45 = vperm.slane %v341_v44, 0  ;;  %v525_v0 = vld [vmem:[#allocation6 + $0x64] sm:$0xff] }
 0x25a   :  { %436 = vmatpush.bf16.msrb.mxu1 %v525_v0 }
 0x25b   :  { %v272_v2 = vpack.c.bf16 %v264_v1, %v264_v1 }
 0x25d   :  { %496 = vmatmul.msk.bf16.vlgmr.msra.gmra.mxu3 %vm43_vm0, %v272_v2 }
 0x2e0   :  { %v298_v6 = vpop.f32.mrf.mxu3 }
 0x2e1   :  { %v299_v7 = vadd.f32 %v298_v6, %v273_v5 }
 0x2e3   :  { %v302_v8 = vmax.f32 %v299_v7, 0.0 }
 0x2e5   :  { %v303_v9 = vrot.slane %v302_v8, 4 }
 0x2e7   :  { %v304_v10 = vadd.f32 %v303_v9, %v302_v8 }
 0x2e8   :  { %v300_v11 = vpop.f32.mrf.mxu3 }
 0x2e9   :  { %v305_v12 = vrot.slane %v304_v10, 2 }
 0x2eb   :  { %v306_v13 = vadd.f32 %v305_v12, %v304_v10 }
 0x2ed   :  { %v307_v14 = vrot.slane %v306_v13, 1 }
 0x2ef   :  { %v308_v15 = vadd.f32 %v307_v14, %v306_v13  ;;  %v403_v14 = vperm.slane %v341_v44, 2 }
 0x2f1   :  { %v309_v16 = vmul.f32 %v308_v15, %v654_v26 }
 0x2f3   :  { %v310_v17 = vsub.f32 %v302_v8, %v309_v16 }
 0x2f5   :  { %v311_v18 = vmul.f32 %v310_v17, %v310_v17 }
 0x2f7   :  { %v312_v19 = vrot.slane %v311_v18, 4 }
 0x2f9   :  { %v313_v20 = vadd.f32 %v312_v19, %v311_v18 }
 0x2fb   :  { %v314_v22 = vrot.slane %v313_v20, 2 }
 0x2fd   :  { %v315_v23 = vadd.f32 %v314_v22, %v313_v20 }
 0x2ff   :  { %v316_v25 = vrot.slane %v315_v23, 1 }
 0x301   :  { %v317_v27 = vadd.f32 %v316_v25, %v315_v23 }
 0x303   :  { %v318_v28 = vmul.f32 %v317_v27, %v654_v26 }
 0x305   :  { %v319_v29 = vadd.f32 1e-05, %v318_v28 }
 0x307   :  { %542 = vrsqrt.f32 %v319_v29  ;;  %vm326_vm13 = vweird.f32 %v319_v29 }
 0x30d   :  { %v543_v30 = vpop.eup %542 }
 0x30e   :  { %v321_v31 = vmul.f32 %v543_v30, %v319_v29  ;;  %vm327_vm12 = vweird.f32 %v543_v30 }
 0x30f   :  { %vm328_vm14 = vmor %vm326_vm13, %vm327_vm12 }
 0x310   :  { %v322_v32 = vmul.f32 %v543_v30, %v321_v31 }
 0x312   :  { %v323_v33 = vmul.f32 0.5, %v322_v32 }
 0x314   :  { %v324_v34 = vsub.f32 1.5, %v323_v33 }
 0x316   :  { %v325_v35 = vmul.f32 %v543_v30, %v324_v34 }
 0x318   :  { %v329_v36 = vsel %vm328_vm14, %v543_v30, %v325_v35 }
 0x319   :  { %v330_v37 = vmul.f32 %v329_v36, %v271_v4 }
 0x31b   :  { %v331_v38 = vperm.slane %v330_v37, 1 }
 0x31d   :  { %v332_v40 = vmul.f32 %v331_v38, %v310_v17 }
 0x31f   :  { %v334_v41 = vadd.f32 %v333_v39, %v332_v40 }
 0x321   :  { %v342_v42 = vpack.c.bf16 %v334_v41, %v334_v41 }
 0x323   :  { %505 = vmatmul.msk.bf16.vlgmr.msrb.gmra.mxu0 %vm43_vm0, %v342_v42 }
 0x3a0   :  { %v368_v46 = vpop.f32.mrf.mxu0 }
 0x3a1   :  { %v369_v47 = vadd.f32 %v368_v46, %v343_v45 }
 0x3a3   :  { %v372_v48 = vmax.f32 %v369_v47, 0.0 }
 0x3a5   :  { %v373_v49 = vrot.slane %v372_v48, 4 }
 0x3a7   :  { %v374_v50 = vadd.f32 %v373_v49, %v372_v48 }
 0x3a8   :  { %v370_v51 = vpop.f32.mrf.mxu0 }
 0x3a9   :  { %v375_v52 = vrot.slane %v374_v50, 2 }
 0x3ab   :  { %v376_v53 = vadd.f32 %v375_v52, %v374_v50 }
 0x3ad   :  { %v377_v54 = vrot.slane %v376_v53, 1 }
 0x3af   :  { %v378_v55 = vadd.f32 %v377_v54, %v376_v53 }
 0x3b1   :  { %v379_v56 = vmul.f32 %v378_v55, %v654_v26 }
 0x3b3   :  { %v380_v57 = vsub.f32 %v372_v48, %v379_v56 }
 0x3b5   :  { %v381_v58 = vmul.f32 %v380_v57, %v380_v57 }
 0x3b7   :  { %v382_v59 = vrot.slane %v381_v58, 4 }
 0x3b9   :  { %v383_v60 = vadd.f32 %v382_v59, %v381_v58 }
 0x3bb   :  { %v384_v62 = vrot.slane %v383_v60, 2 }
 0x3bd   :  { %v385_v63 = vadd.f32 %v384_v62, %v383_v60 }
 0x3bf   :  { %v386_v1 = vrot.slane %v385_v63, 1 }
 0x3c1   :  { %v387_v2 = vadd.f32 %v386_v1, %v385_v63 }
 0x3c3   :  { %v388_v3 = vmul.f32 %v387_v2, %v654_v26  ;;  %v410_v26 = vld [vmem:[#allocation6 + $0x74] sm:$0x1] }
 0x3c4   :  { %v411_v18 = vunpack.c.l.bf16 %v410_v26 }
 0x3c5   :  { %v389_v4 = vadd.f32 1e-05, %v388_v3 }
 0x3c6   :  { %v413_v19 = vperm.slane %v411_v18, 0 }
 0x3c7   :  { %544 = vrsqrt.f32 %v389_v4  ;;  %vm396_vm1 = vweird.f32 %v389_v4 }
 0x3cd   :  { %v545_v5 = vpop.eup %544 }
 0x3ce   :  { %v391_v6 = vmul.f32 %v545_v5, %v389_v4  ;;  %vm397_vm15 = vweird.f32 %v545_v5 }
 0x3cf   :  { %vm398_vm2 = vmor %vm396_vm1, %vm397_vm15 }
 0x3d0   :  { %v392_v7 = vmul.f32 %v545_v5, %v391_v6 }
 0x3d2   :  { %v393_v8 = vmul.f32 0.5, %v392_v7 }
 0x3d4   :  { %v394_v9 = vsub.f32 1.5, %v393_v8 }
 0x3d6   :  { %v395_v10 = vmul.f32 %v545_v5, %v394_v9 }
 0x3d8   :  { %v399_v11 = vsel %vm398_vm2, %v545_v5, %v395_v10 }
 0x3d9   :  { %v400_v12 = vmul.f32 %v399_v11, %v341_v44 }
 0x3db   :  { %v401_v13 = vperm.slane %v400_v12, 1 }
 0x3dd   :  { %v402_v15 = vmul.f32 %v401_v13, %v380_v57 }
 0x3df   :  { %v404_v16 = vadd.f32 %v403_v14, %v402_v15 }
 0x3e1   :  { %v412_v17 = vpack.c.bf16 %v404_v16, %v404_v16 }
 0x3e3   :  { %514 = vmatmul.msk.bf16.vlgmr.msrb.gmra.mxu1 %vm43_vm0, %v412_v17 }
 0x460   :  { %v438_v20 = vpop.f32.mrf.mxu1 }
 0x461   :  { %v439_v21 = vadd.f32 %v438_v20, %v413_v19 }
 0x463   :  { %442 = vst [vmem:[#allocation8] sm:$0xff] %v439_v21 }
 0x464   :  { %453 = dma.vmem_to_hbm [thread:$0]  %s449_s1, 128, %s451_s23, [#allocation5]  }
 0x468   :  { %v440_v22 = vpop.f32.mrf.mxu1 }
 0x469   :  { %622 = dma.done.wait [#allocation5], 128  }
 0x46a   :  { %623 = vsyncadd [#allocation5], 4294967168 }
 0x46b   :  { %458 = vsyncpa [#allocation4], 1 }
 0x46c   :  { %459 = vsyncpa [#allocation7], 1 }
 0x46d   :  { %460 = vsyncpa [#allocation5], 1 }

</bundles_post_ra>
